<compile_context>
chip_gen: v5e
topology: v5e:2x2
jax: 0.10.0
libtpu: 0.0.40
codegen_flags: <defaults>
</compile_context>

<pallas_src>
import math

import jax
import jax.numpy as jnp
from jax import lax
from jax.experimental import pallas as pl
from jax.experimental.pallas import tpu as pltpu

_INV_SQRT2 = 1.0 / math.sqrt(2.0)


def _round_up(x, m):
    return ((x + m - 1) // m) * m


def _gelu_exact_f32(h):
    # Exact (erf-based) GELU in f32 — matches torch.nn.GELU() default.
    return 0.5 * h * (1.0 + lax.erf(h * _INV_SQRT2))


# ----------------------------------------------------------------------------
# Kernels
# ----------------------------------------------------------------------------
def _mlp_kernel_fused(x_ref, wfc_ref, bfc_ref, wproj_ref, bproj_ref, o_ref):
    """Single hidden step: full weights VMEM-resident, no accumulator scratch.

    x_ref:     (tm, W)   input rows (native dtype, fed to the MXU as-is)
    wfc_ref:   (W, H)    c_fc weight, pre-transposed to (in, out)
    bfc_ref:   (1, H)
    wproj_ref: (H, W)    c_proj weight, pre-transposed to (in, out)
    bproj_ref: (1, W)
    o_ref:     (tm, W)
    """
    h = jnp.dot(x_ref[...], wfc_ref[...], preferred_element_type=jnp.float32)
    h = _gelu_exact_f32(h + bfc_ref[...].astype(jnp.float32))
    out = jnp.dot(h.astype(wproj_ref.dtype), wproj_ref[...],
                  preferred_element_type=jnp.float32)
    o_ref[...] = (out + bproj_ref[...].astype(jnp.float32)).astype(o_ref.dtype)


def _mlp_kernel_hidden_tiled(x_ref, wfc_ref, bfc_ref, wproj_ref, bproj_ref,
                             o_ref, acc_ref):
    """Hidden (4W) dimension tiled as an inner 'arbitrary' reduction axis.

    Only a (W, th) slice of W_fc^T and a (th, W) slice of W_proj^T are
    VMEM-resident at a time; c_proj partial sums accumulate in f32 scratch.
    """
    k = pl.program_id(1)

    h = jnp.dot(x_ref[...], wfc_ref[...], preferred_element_type=jnp.float32)
    h = _gelu_exact_f32(h + bfc_ref[...].astype(jnp.float32))
    partial = jnp.dot(h.astype(wproj_ref.dtype), wproj_ref[...],
                      preferred_element_type=jnp.float32)

    @pl.when(k == 0)
    def _():                       # assign on first step: no zero-fill store
        acc_ref[...] = partial

    @pl.when(k != 0)
    def _():
        acc_ref[...] += partial

    @pl.when(k == pl.num_programs(1) - 1)
    def _():
        o_ref[...] = (acc_ref[...]
                      + bproj_ref[...].astype(jnp.float32)).astype(o_ref.dtype)


# ----------------------------------------------------------------------------
# Tiling heuristics
# ----------------------------------------------------------------------------
def _vmem_budget_bytes():
    """~80% of physical per-core VMEM (leaves headroom for Mosaic scratch)."""
    try:
        cap = int(pltpu.get_tpu_info().vmem_capacity_bytes)
    except Exception:
        cap = 64 * 1024 * 1024  # conservative fallback (v7x per-TensorCore)
    return int(cap * 0.8)


def _row_align(dtype):
    """Native sublane tiling: 8 rows for 32-bit, 16 for bf16, 32 for 8-bit."""
    itemsize = jnp.dtype(dtype).itemsize
    return max(8, 32 // max(1, itemsize))


def _choose_row_tile(M, tm_max, align):
    """Big tile for MXU utilization, low padding waste, >=2 blocks when possible."""
    M_aligned = _round_up(M, align)
    cap = max(align, (min(tm_max, M_aligned) // align) * align)
    # Guarantee grid[0] >= 2 when there is enough work (v7x: 2 TCs/chip).
    if M_aligned >= 2 * align:
        cap = min(cap, max(align, _round_up((M_aligned + 1) // 2, align)))
    candidates, t = [], cap
    while True:
        candidates.append(t)
        if t <= align:
            break
        t = max(align, ((t // 2) // align) * align)
    max_pad = max(align, M // 8)  # accept up to ~12.5% padded rows
    for t in candidates:
        if _round_up(M, t) - M <= max_pad:
            return t
    return min(candidates, key=lambda c: (_round_up(M, c), -c))


def _fits_vmem(tm, th, W, H, dx, dw, do, budget):
    """Rough VMEM footprint: double-buffered inputs/outputs + f32 intermediates."""
    n_in = tm * W * dx + W * th * dw + th * dw + th * W * dw + W * dw
    n_out = tm * W * do
    interm = tm * th * 4                    # GELU intermediate (f32)
    acc = 0 if th == H else tm * W * 4      # f32 accumulator (tiled path only)
    headroom = 2 << 20                      # Mosaic internal scratch
    return 2 * n_in + 2 * n_out + interm + acc + headroom <= budget


def _choose_hidden_tile(tm, W, H, dx, dw, do, budget, force=None):
    if force is not None:
        return force
    candidates = [H] + [c for c in (4096, 2048, 1024, 512, 256, 128)
                        if c < H and H % c == 0]
    for th in candidates:
        if _fits_vmem(tm, th, W, H, dx, dw, do, budget):
            return th
    return candidates[-1]  # graceful degrade: smallest lane-dense slice


# ----------------------------------------------------------------------------
# Wrapper
# ----------------------------------------------------------------------------
def mlp_forward(x, w_fc, b_fc, w_proj, b_proj, *, tm_max=256,
                compute_dtype=None, force_hidden_tile=None):
    """MLP forward.

    x:      (..., W)
    w_fc:   (4W, W)  torch nn.Linear layout (out, in)
    b_fc:   (4W,)
    w_proj: (W, 4W)  torch layout
    b_proj: (W,)
    compute_dtype: optionally cast x / weights (e.g. jnp.bfloat16) for MXU peak;
                   default None keeps torch-f32 numerics (accumulation is f32
                   either way).
    """
    orig_shape = x.shape
    out_dtype = x.dtype
    W = orig_shape[-1]
    H = 4 * W
    assert w_fc.shape == (H, W) and w_proj.shape == (W, H)

    if compute_dtype is not None:
        x = x.astype(compute_dtype)
        w_fc = w_fc.astype(compute_dtype)
        w_proj = w_proj.astype(compute_dtype)

    x2 = x.reshape(-1, W)
    M = x2.shape[0]

    dx = jnp.dtype(x2.dtype).itemsize
    dw = jnp.dtype(w_fc.dtype).itemsize
    do = dx

    align = _row_align(x2.dtype)
    tm = _choose_row_tile(M, tm_max, align)
    M_pad = _round_up(M, tm)
    if M_pad != M:
        x2 = jnp.pad(x2, ((0, M_pad - M), (0, 0)))

    budget = _vmem_budget_bytes()
    th = _choose_hidden_tile(tm, W, H, dx, dw, do, budget, force_hidden_tile)
    assert H % th == 0

    # Pre-transpose weights ONCE to (in, out) so both in-kernel contractions are
    # plain (M,K)x(K,N) MXU matmuls (no per-tile XLU transposes).
    # TODO(synk): store the parameters in (in, out) layout to avoid even this
    # one-time per-call XLA transpose.
    wfc_t = w_fc.T       # (W, H)
    wproj_t = w_proj.T   # (H, W)
    bfc2 = b_fc.reshape(1, H)
    bproj2 = b_proj.reshape(1, W)

    n_row = M_pad // tm
    weight_bytes = wfc_t.size * dw + wproj_t.size * dw
    weight_passes = 1 if th == H else n_row   # weights re-streamed only if tiled
    cost = pl.CostEstimate(
        flops=4 * M_pad * W * H,               # two matmuls, 2*M*W*H flops each
        transcendentals=M_pad * H,             # one erf per hidden activation
        bytes_accessed=(M_pad * W * dx + M_pad * W * do
                        + weight_passes * weight_bytes
                        + bfc2.size * dw + bproj2.size * dw),
    )

    if th == H:
        # Fused path: full weights VMEM-resident, constant index_map -> weights
        # are DMA'd from HBM exactly once for the whole call.
        grid_spec = pltpu.PrefetchScalarGridSpec(
            num_scalar_prefetch=0,
            grid=(n_row,),
            in_specs=[
                pl.BlockSpec((tm, W), lambda i: (i, 0)),   # x rows
                pl.BlockSpec((W, H), lambda i: (0, 0)),    # W_fc^T  (loaded once)
                pl.BlockSpec((1, H), lambda i: (0, 0)),    # b_fc
                pl.BlockSpec((H, W), lambda i: (0, 0)),    # W_proj^T (loaded once)
                pl.BlockSpec((1, W), lambda i: (0, 0)),    # b_proj
            ],
            out_specs=pl.BlockSpec((tm, W), lambda i: (i, 0)),
        )
        kernel = _mlp_kernel_fused
        dim_sem = ("parallel",)
    else:
        # Hidden-tiled reduction path (weights too big for VMEM budget).
        grid_spec = pltpu.PrefetchScalarGridSpec(
            num_scalar_prefetch=0,
            grid=(n_row, H // th),
            in_specs=[
                pl.BlockSpec((tm, W), lambda i, k: (i, 0)),
                pl.BlockSpec((W, th), lambda i, k: (0, k)),
                pl.BlockSpec((1, th), lambda i, k: (0, k)),
                pl.BlockSpec((th, W), lambda i, k: (k, 0)),
                pl.BlockSpec((1, W), lambda i, k: (0, 0)),
            ],
            out_specs=pl.BlockSpec((tm, W), lambda i, k: (i, 0)),
            scratch_shapes=[pltpu.VMEM((tm, W), jnp.float32)],
        )
        kernel = _mlp_kernel_hidden_tiled
        dim_sem = ("parallel", "arbitrary")

    out = pl.pallas_call(
        kernel,
        out_shape=jax.ShapeDtypeStruct((M_pad, W), x2.dtype),
        grid_spec=grid_spec,
        compiler_params=pltpu.CompilerParams(
            dimension_semantics=dim_sem,
            vmem_limit_bytes=budget,
        ),
        cost_estimate=cost,
    )(x2, wfc_t, bfc2, wproj_t, bproj2)

    if M_pad != M:
        out = out[:M]
    return out.reshape(orig_shape).astype(out_dtype)


# ----------------------------------------------------------------------------
# Params / reference / demo
# ----------------------------------------------------------------------------
def init_mlp_params(key, width, dtype=jnp.float32):
    """Deterministic init mimicking nn.Linear default (uniform(+-1/sqrt(fan_in)))."""
    hidden = 4 * width
    k1, k2, k3, k4 = jax.random.split(key, 4)
    bound_fc = 1.0 / math.sqrt(width)
    bound_proj = 1.0 / math.sqrt(hidden)
    w_fc = jax.random.uniform(k1, (hidden, width), dtype, -bound_fc, bound_fc)
    b_fc = jax.random.uniform(k2, (hidden,), dtype, -bound_fc, bound_fc)
    w_proj = jax.random.uniform(k3, (width, hidden), dtype, -bound_proj, bound_proj)
    b_proj = jax.random.uniform(k4, (width,), dtype, -bound_proj, bound_proj)
    return w_fc, b_fc, w_proj, b_proj


def _mlp_ref(x, w_fc, b_fc, w_proj, b_proj):
    h = x @ w_fc.T + b_fc
    h = _gelu_exact_f32(h)
    return h @ w_proj.T + b_proj


if __name__ == "__main__":
    key = jax.random.PRNGKey(0)
    kx, kp = jax.random.split(key)

    # Small lane-dense shapes: width=128 (hidden=512), M = batch*seq = 16 rows.
    batch, seq, width = 2, 8, 128
    x = jax.random.normal(kx, (batch, seq, width), dtype=jnp.float32)
    w_fc, b_fc, w_proj, b_proj = init_mlp_params(kp, width)

    y_ref = _mlp_ref(x.reshape(-1, width), w_fc, b_fc, w_proj,
                     b_proj).reshape(batch, seq, width)

    # Path 1: fused kernel (full weights VMEM-resident, single hidden step).
    y1 = jax.block_until_ready(mlp_forward(x, w_fc, b_fc, w_proj, b_proj))

    # Path 2: hidden-tiled reduction kernel (forced small hidden slice) — this
    # exercises the fallback that kicks in when weights exceed the VMEM budget.
    y2 = jax.block_until_ready(
        mlp_forward(x, w_fc, b_fc, w_proj, b_proj, force_hidden_tile=128))

    assert y1.shape == (batch, seq, width)
    assert y2.shape == (batch, seq, width)
    assert jnp.allclose(y1, y_ref, atol=1e-4, rtol=1e-4), "fused path mismatch"
    assert jnp.allclose(y2, y_ref, atol=1e-4, rtol=1e-4), "tiled path mismatch"

    print("KERNEL_OK")
</pallas_src>

<mosaic_0001>
module attributes {stable_mosaic.version = 11 : i64} {
  func.func @_mlp_kernel_fused(%arg0: i32, %arg1: memref<8x128xf32, #tpu.memory_space<vmem>>, %arg2: memref<128x512xf32, #tpu.memory_space<vmem>>, %arg3: memref<1x512xf32, #tpu.memory_space<vmem>>, %arg4: memref<512x128xf32, #tpu.memory_space<vmem>>, %arg5: memref<1x128xf32, #tpu.memory_space<vmem>>, %arg6: memref<8x128xf32, #tpu.memory_space<vmem>>) attributes {dimension_semantics = [#tpu.dimension_semantics<parallel>], iteration_bounds = array<i64: 2>, scalar_prefetch = 0 : i64, scratch_operands = 0 : i64, tpu.core_type = #tpu.core_type<tc>, window_params = [{transform_indices = @transform_0, window_bounds = array<i64: 8, 128>}, {pipeline_mode = #tpu.pipeline_mode<synchronous>, transform_indices = @transform_1, window_bounds = array<i64: 128, 512>}, {pipeline_mode = #tpu.pipeline_mode<synchronous>, transform_indices = @transform_2, window_bounds = array<i64: 1, 512>}, {pipeline_mode = #tpu.pipeline_mode<synchronous>, transform_indices = @transform_3, window_bounds = array<i64: 512, 128>}, {pipeline_mode = #tpu.pipeline_mode<synchronous>, transform_indices = @transform_4, window_bounds = array<i64: 1, 128>}, {transform_indices = @transform_5, window_bounds = array<i64: 8, 128>}]} {
    %c0 = arith.constant 0 : index
    %c0_0 = arith.constant 0 : index
    %0 = vector.load %arg1[%c0, %c0_0] : memref<8x128xf32, #tpu.memory_space<vmem>>, vector<8x128xf32>
    %c0_1 = arith.constant 0 : index
    %c0_2 = arith.constant 0 : index
    %1 = vector.load %arg2[%c0_1, %c0_2] : memref<128x512xf32, #tpu.memory_space<vmem>>, vector<128x512xf32>
    %cst = arith.constant dense<0.000000e+00> : vector<8x512xf32>
    %2 = tpu.matmul %0, %1, %cst {dimension_numbers = #tpu.dot_dimension_numbers<[1], [0], [0], [1], [0, 0, 1, 1], [], []>} : vector<8x128xf32>, vector<128x512xf32>, vector<8x512xf32> -> vector<8x512xf32>
    %c0_3 = arith.constant 0 : index
    %c0_4 = arith.constant 0 : index
    %3 = vector.load %arg3[%c0_3, %c0_4] : memref<1x512xf32, #tpu.memory_space<vmem>>, vector<1x512xf32>
    %4 = vector.broadcast %3 : vector<1x512xf32> to vector<8x512xf32>
    %5 = arith.addf %2, %4 : vector<8x512xf32>
    %cst_5 = arith.constant 5.000000e-01 : f32
    %6 = vector.broadcast %cst_5 : f32 to vector<8x512xf32>
    %7 = arith.mulf %6, %5 : vector<8x512xf32>
    %cst_6 = arith.constant 0.707106769 : f32
    %8 = vector.broadcast %cst_6 : f32 to vector<8x512xf32>
    %9 = arith.mulf %5, %8 : vector<8x512xf32>
    %10 = math.erf %9 : vector<8x512xf32>
    %cst_7 = arith.constant 1.000000e+00 : f32
    %11 = vector.broadcast %cst_7 : f32 to vector<8x512xf32>
    %12 = arith.addf %11, %10 : vector<8x512xf32>
    %13 = arith.mulf %7, %12 : vector<8x512xf32>
    %c0_8 = arith.constant 0 : index
    %c0_9 = arith.constant 0 : index
    %14 = vector.load %arg4[%c0_8, %c0_9] : memref<512x128xf32, #tpu.memory_space<vmem>>, vector<512x128xf32>
    %cst_10 = arith.constant dense<0.000000e+00> : vector<8x128xf32>
    %15 = tpu.matmul %13, %14, %cst_10 {dimension_numbers = #tpu.dot_dimension_numbers<[1], [0], [0], [1], [0, 0, 1, 1], [], []>} : vector<8x512xf32>, vector<512x128xf32>, vector<8x128xf32> -> vector<8x128xf32>
    %c0_11 = arith.constant 0 : index
    %c0_12 = arith.constant 0 : index
    %16 = vector.load %arg5[%c0_11, %c0_12] : memref<1x128xf32, #tpu.memory_space<vmem>>, vector<1x128xf32>
    %17 = vector.broadcast %16 : vector<1x128xf32> to vector<8x128xf32>
    %18 = arith.addf %15, %17 : vector<8x128xf32>
    %c0_13 = arith.constant 0 : index
    %c0_14 = arith.constant 0 : index
    %19 = vector.load %arg6[%c0_13, %c0_14] : memref<8x128xf32, #tpu.memory_space<vmem>>, vector<8x128xf32>
    tpu.vector_store %arg6[%c0_13, %c0_14], %18 {strides = array<i32>} : memref<8x128xf32, #tpu.memory_space<vmem>>, vector<8x128xf32>,
    return
  }
  func.func @transform_0(%arg0: i32) -> (i32, i32) {
    %c0_i32 = arith.constant 0 : i32
    %c0_i32_0 = arith.constant 0 : i32
    return %arg0, %c0_i32 : i32, i32
  }
  func.func @transform_1(%arg0: i32) -> (i32, i32) {
    %c0_i32 = arith.constant 0 : i32
    %c0_i32_0 = arith.constant 0 : i32
    %c0_i32_1 = arith.constant 0 : i32
    return %c0_i32, %c0_i32_0 : i32, i32
  }
  func.func @transform_2(%arg0: i32) -> (i32, i32) {
    %c0_i32 = arith.constant 0 : i32
    %c0_i32_0 = arith.constant 0 : i32
    %c0_i32_1 = arith.constant 0 : i32
    return %c0_i32, %c0_i32_0 : i32, i32
  }
  func.func @transform_3(%arg0: i32) -> (i32, i32) {
    %c0_i32 = arith.constant 0 : i32
    %c0_i32_0 = arith.constant 0 : i32
    %c0_i32_1 = arith.constant 0 : i32
    return %c0_i32, %c0_i32_0 : i32, i32
  }
  func.func @transform_4(%arg0: i32) -> (i32, i32) {
    %c0_i32 = arith.constant 0 : i32
    %c0_i32_0 = arith.constant 0 : i32
    %c0_i32_1 = arith.constant 0 : i32
    return %c0_i32, %c0_i32_0 : i32, i32
  }
  func.func @transform_5(%arg0: i32) -> (i32, i32) {
    %c0_i32 = arith.constant 0 : i32
    %c0_i32_0 = arith.constant 0 : i32
    return %arg0, %c0_i32 : i32, i32
  }
}

</mosaic_0001>

<bundles_post_ra>
// kernel: tpu_custom_call.1
= control target key start
LH: loop header
LB: loop body
LE: loop exit
PB: predicated region body
PF: predicated region fallthrough
CT: control target
= control target key end

     0   :  { %10 = vsyncpa [#allocation3], 0  ;;  %s1525_s0 = inlined_call_operand.hbm [shape: f32[16,128], index: 0, kind: input, shape index: {}]   ;;  %s1526_s1 = inlined_call_operand.hbm [shape: f32[128,512], index: 1, kind: input, shape index: {}]   ;;  %s1527_s2 = inlined_call_operand.hbm [shape: f32[1,512], index: 2, kind: input, shape index: {}]   ;;  %s1528_s3 = inlined_call_operand.hbm [shape: f32[512,128], index: 3, kind: input, shape index: {}]   ;;  %s1529_s4 = inlined_call_operand.vmem [shape: f32[1,128], index: 4, kind: input, shape index: {}]   ;;  %s1530_s5 = inlined_call_operand.hbm [shape: f32[16,128], index: 5, kind: output, shape index: {}]  }
   0x1   :  { %12 = vsyncpa [#allocation3 + $0x1], 0 }
   0x2   :  { %13 = vsyncpa [#allocation6], 0 }
   0x3   :  { %14 = vsyncpa [#allocation9], 0 }
   0x4   :  { %15 = vsyncpa [#allocation4], 0 }
   0x5   :  { %17 = vsyncpa [#allocation4 + $0x1], 0  ;;  %s1230_s18 = smov 0   ;;  %s1232_s19 = smov 0  }
   0x6   :  { %s1234_s20 = smov 0   ;;  %s1236_s21 = smov 0  }
   0x7 LB: > { %s175_s24 = sshll.u32 %s1526_s1, 4  ;;  %s1254_s25 = sadd.s32 4294967295, %s1191_s21   ;;  %s1191_s21 = sphi %s1236_s21, %s1543_s21   ;;  %s1187_s20 = sphi %s1234_s20, %s1542_s20   ;;  %s1183_s19 = sphi %s1232_s19, %s1541_s19   ;;  %s1179_s18 = sphi %s1230_s18, %s1540_s18   ;;  %s176_s24 = int_to_ptr.hbm [resolvable:$true] %s175_s24 }
   0x8   : > { %p886_p0 = scmp.ge.s32.totalorder %s1191_s21, 1  ;;  %p44_p1 = scmp.eq.s32.totalorder %s1254_s25, 0 }
   0x9   : > { %p164_p2 = scmp.lt.s32.totalorder %s1191_s21, 3  ;;  %s1193_s27 = smov [#allocation5]  }
   0xa   : > { %s177_s28 = sshll.u32 %s1193_s27, 4  ;;  %s190_s6 = sshll.u32 %s1527_s2, 4  ;;  %s178_s28 = int_to_ptr.vmem [resolvable:$true] %s177_s28  ;;  %s191_s6 = int_to_ptr.hbm [resolvable:$true] %s190_s6 }
   0xb   : > { %p1259_p3 = pnand %p886_p0, %p164_p2  ;;  %s201_s10 = sshll.u32 %s1528_s3, 4  ;;  %s202_s10 = int_to_ptr.hbm [resolvable:$true] %s201_s10 }
   0xc   : > { %s1194_s11 = smov [#allocation7]   ;;  %s1195_s13 = smov 512  }
   0xd   : > { %p923_p4 = pneg %p1259_p3  ;;  %s192_s12 = sshll.u32 %s1194_s11, 4  ;;  %s193_s12 = int_to_ptr.vmem [resolvable:$true] %s192_s12 }
   0xe   : > { %s1196_s14 = smov 32   ;;  %s1197_s15 = smov [#allocation8]  }
   0xf   : > { %p1271_p6 = pnand %p923_p4, %p44_p1  ;;  %s203_s16 = sshll.u32 %s1197_s15, 4  ;;  %s204_s16 = int_to_ptr.vmem [resolvable:$true] %s203_s16 }
  0x10   : > { %s1198_s17 = smov 128   ;;  %s1199_s22 = smov 8  }
  0x11   : > { %926 = dma.hbm_to_vmem [thread:$0]  (!%p1271_p6), %s176_s24, 8192, %s178_s28, [#allocation6], %s1195_s13, %s1195_s13, %s1196_s14  }
  0x12   : > { %929 = dma.hbm_to_vmem [thread:$0]  (!%p1271_p6), %s191_s6, 64, %s193_s12, [#allocation6]  }
  0x13   : > { %932 = dma.hbm_to_vmem [thread:$0]  (!%p1271_p6), %s202_s10, 8192, %s204_s16, [#allocation9], %s1198_s17, %s1198_s17, %s1199_s22  }
  0x14   : > { %s885_s23 = sadd.s32 4294967294, %s1191_s21   ;;  %s1286_s24 = sadd.s32 1, %s1191_s21  }
  0x15   : > { %s30_s27 = sadd.s32 1, %s1187_s20  ;;  %s27_s28 = ssub.s32 %s1191_s21, %s1286_s24 }
  0x16   : > { %p37_p7 = scmp.ne.s32.totalorder %s1187_s20, %s1183_s19  ;;  %p28_p8 = scmp.eq.s32.totalorder %s27_s28, 0 }
  0x17   : > { %p38_p9 = scmp.eq.s32.totalorder %s1191_s21, 0  ;;  %p43_p10 = scmp.ne.s32.totalorder %s1183_s19, %s1179_s18 }
  0x18   : > { %p151_p11 = scmp.eq.s32.totalorder %s1254_s25, 1  ;;  %p157_p0 = scmp.eq.s32.totalorder %s885_s23, 1 }
  0x19   : > { %s1298_s29 = scalar_select %p28_p8, %s1187_s20, %s30_s27  }
  0x1a   : > { %p1302_p12 = por %p44_p1, %p43_p10  ;;  %p1306_p13 = por %p151_p11, %p37_p7 }
  0x1b   : > { %p39_p2 = por %p38_p9, %p37_p7  ;;  %s220_s7 = sand.u32 1, %s1187_s20  }
  0x1c   : > { %p1311_p4 = por %p157_p0, %p43_p10  ;;  %p944_p6 = scmp.lt.s32.totalorder %s1191_s21, 2 }
  0x1d   : > { %s891_s9 = sshll.u32 %s220_s7, 3  ;;  %s892_s10 = sshll.u32 %s1191_s21, 3 }
  0x1e   : > { %s228_s13 = scalar_lea.hbm %s1525_s0, %s892_s10  ;;  %s224_s15 = scalar_lea.vmem [#allocation2], %s891_s9 }
  0x1f   : > { %s230_s14 = sshll.u32 %s228_s13, 4  ;;  %s232_s16 = sshll.u32 %s224_s15, 4  ;;  %s231_s14 = int_to_ptr.hbm [resolvable:$true] %s230_s14  ;;  %s233_s16 = int_to_ptr.vmem [resolvable:$true] %s232_s16 }
  0x20   : > { %p1320_p8 = pnand %p944_p6, %p39_p2  ;;  %s221_s22 = scalar_lea.sflag [#allocation3], %s220_s7 }
  0x21   : > { %s1087_s23 = sshra.s32 %s231_s14, 4  ;;  %s1094_s9 = scalar_lea.hbm %s1525_s0, 16  ;;  %s1088_s23 = int_to_ptr.hbm [resolvable:$true] %s1087_s23 }
  0x22   : > { %s1089_s27 = scalar_lea.hbm %s1088_s23, 8  ;;  %p1091_p9 = pneg %p1320_p8 }
  0x23   : > { %p1090_p7 = scmp.ne.s32.totalorder %s1088_s23, %s1089_s27  ;;  %p1095_p0 = scmp.lt.s32.totalorder %s1088_s23, %s1525_s0 }
  0x24   : > { %p1096_p2 = scmp.lt.s32.totalorder %s1094_s9, %s1089_s27 }
  0x25   : > { %p1092_p10 = pnand %p1091_p9, %p1090_p7 }
  0x26   : > { %p1097_p6 = por %p1096_p2, %p1095_p0 }
  0x27   : > { %p1093_p11 = pneg %p1092_p10 }
  0x29   : > { %p1098_p5 = pnand %p1097_p6, %p1093_p11 }
  0x2b   : > { %1101 = shalt.err (!%p1098_p5)
}
  0x2c   : > { %936 = dma.hbm_to_vmem [thread:$0]  (!%p1320_p8), %s231_s14, 128, %s233_s16, %s221_s22  }
  0x2d   : > { %241 = sbr.rel (%p1259_p3) target bundleno = 415 (0x19f), region = 40  ;;  %s1337_s7 = sand.u32 (!%p1259_p3), 1, %s1183_s19  }
  0x2e   : > { %s894_s13 = sshll.u32 (!%p1259_p3), %s1337_s7, 3  ;;  %s244_s15 = scalar_lea.sflag (!%p1259_p3), [#allocation3], %s1337_s7 }
  0x2f   : > { %s1343_s23 = scalar_lea.vmem (!%p1259_p3), [#allocation2], %s894_s13 }
  0x32   : > { %1162 = dma.done.wait (%p1302_p12), %s244_s15, 128  }
  0x33   : > { %1164 = vsyncadd (%p1302_p12), %s244_s15, 4294967168 }
  0x34   : > { %1166 = dma.done.wait (%p44_p1), [#allocation6], 8256  }
  0x35   : > { %1168 = vsyncadd (%p44_p1), [#allocation6], 4294959040 }
  0x36   : > { %1170 = dma.done.wait (%p44_p1), [#allocation9], 8192  }
  0x37   : > { %1172 = vsyncadd (%p44_p1), [#allocation9], 4294959104  ;;  %v351_v0 = vld [vmem:[#allocation5 + $0x1e0] sm:$0xff]  ;;  %v352_v1 = vld [vmem:[#allocation5 + $0x1e8] sm:$0xff]  ;;  %s904_s14 = sshll.u32 %s1254_s25, 3  ;;  %s289_s27 = scalar_lea.vmem [#allocation10], %s894_s13 }
  0x38   : > { %v353_v2 = vld [vmem:[#allocation5 + $0x1f0] sm:$0xff]  ;;  %365 = vmatpush.msra.mxu0 %v351_v0  ;;  %385 = vmatpush.msra.mxu1 %v352_v1  ;;  %v354_v3 = vld [vmem:[#allocation5 + $0x1f8] sm:$0xff]  ;;  %v347_v4 = vld [vmem:[#allocation5 + $0x1c0] sm:$0xff]  ;;  %s781_s22 = scalar_lea.hbm %s1530_s5, %s904_s14  ;;  %s783_s28 = sshll.u32 %s289_s27, 4  ;;  %s784_s28 = int_to_ptr.vmem [resolvable:$true] %s783_s28 }
  0x39   : > { %v348_v5 = vld [vmem:[#allocation5 + $0x1c8] sm:$0xff]  ;;  %405 = vmatpush.msra.mxu2 %v353_v2  ;;  %425 = vmatpush.msra.mxu3 %v354_v3  ;;  %v349_v6 = vld [vmem:[#allocation5 + $0x1d0] sm:$0xff]  ;;  %v350_v7 = vld [vmem:[#allocation5 + $0x1d8] sm:$0xff]  ;;  %s785_s10 = sshll.u32 %s781_s22, 4  ;;  %s771_s9 = scalar_lea.sflag [#allocation4], %s1337_s7  ;;  %s786_s10 = int_to_ptr.hbm [resolvable:$true] %s785_s10 }
  0x3a   : > { %v343_v8 = vld [vmem:[#allocation5 + $0x1a0] sm:$0xff]  ;;  %366 = vmatpush.msra.mxu0 %v347_v4  ;;  %386 = vmatpush.msra.mxu1 %v348_v5  ;;  %v344_v9 = vld [vmem:[#allocation5 + $0x1a8] sm:$0xff]  ;;  %v345_v10 = vld [vmem:[#allocation5 + $0x1b0] sm:$0xff]  ;;  %s1131_s25 = sshra.s32 %s786_s10, 4  ;;  %s1132_s25 = int_to_ptr.hbm [resolvable:$true] %s1131_s25 }
  0x3b   : > { %v346_v11 = vld [vmem:[#allocation5 + $0x1b8] sm:$0xff]  ;;  %406 = vmatpush.msra.mxu2 %v349_v6  ;;  %426 = vmatpush.msra.mxu3 %v350_v7  ;;  %v339_v12 = vld [vmem:[#allocation5 + $0x180] sm:$0xff]  ;;  %v340_v13 = vld [vmem:[#allocation5 + $0x188] sm:$0xff]  ;;  %s1133_s11 = scalar_lea.hbm %s1132_s25, 8  ;;  %p1138_p12 = scmp.lt.s32.totalorder %s1132_s25, %s1530_s5 }
  0x3c   : > { %367 = vmatpush.msra.mxu0 %v343_v8  ;;  %387 = vmatpush.msra.mxu1 %v344_v9  ;;  %v341_v14 = vld [vmem:[#allocation5 + $0x190] sm:$0xff]  ;;  %v342_v15 = vld [vmem:[#allocation5 + $0x198] sm:$0xff]  ;;  %v335_v16 = vld [vmem:[#allocation5 + $0x160] sm:$0xff]  ;;  %p1134_p1 = scmp.ne.s32.totalorder %s1132_s25, %s1133_s11 }
  0x3d   : > { %407 = vmatpush.msra.mxu2 %v345_v10  ;;  %427 = vmatpush.msra.mxu3 %v346_v11  ;;  %v336_v17 = vld [vmem:[#allocation5 + $0x168] sm:$0xff]  ;;  %v337_v18 = vld [vmem:[#allocation5 + $0x170] sm:$0xff]  ;;  %v338_v19 = vld [vmem:[#allocation5 + $0x178] sm:$0xff] }
  0x3e   : > { %368 = vmatpush.msra.mxu0 %v339_v12  ;;  %388 = vmatpush.msra.mxu1 %v340_v13  ;;  %v331_v20 = vld [vmem:[#allocation5 + $0x140] sm:$0xff]  ;;  %v332_v21 = vld [vmem:[#allocation5 + $0x148] sm:$0xff]  ;;  %v333_v22 = vld [vmem:[#allocation5 + $0x150] sm:$0xff]  ;;  %p1135_p3 = pnand %p1134_p1, %p1306_p13 }
  0x3f   : > { %408 = vmatpush.msra.mxu2 %v341_v14  ;;  %428 = vmatpush.msra.mxu3 %v342_v15  ;;  %v334_v23 = vld [vmem:[#allocation5 + $0x158] sm:$0xff]  ;;  %v327_v24 = vld [vmem:[#allocation5 + $0x120] sm:$0xff]  ;;  %v328_v25 = vld [vmem:[#allocation5 + $0x128] sm:$0xff] }
  0x40   : > { %369 = vmatpush.msra.mxu0 %v335_v16  ;;  %389 = vmatpush.msra.mxu1 %v336_v17  ;;  %v329_v26 = vld [vmem:[#allocation5 + $0x130] sm:$0xff]  ;;  %v330_v27 = vld [vmem:[#allocation5 + $0x138] sm:$0xff]  ;;  %v323_v28 = vld [vmem:[#allocation5 + $0x100] sm:$0xff]  ;;  %p1136_p5 = pneg %p1135_p3 }
  0x41   : > { %409 = vmatpush.msra.mxu2 %v337_v18  ;;  %429 = vmatpush.msra.mxu3 %v338_v19  ;;  %v324_v29 = vld [vmem:[#allocation5 + $0x108] sm:$0xff]  ;;  %v325_v30 = vld [vmem:[#allocation5 + $0x110] sm:$0xff]  ;;  %v326_v31 = vld [vmem:[#allocation5 + $0x118] sm:$0xff] }
  0x42   : > { %370 = vmatpush.msra.mxu0 %v331_v20  ;;  %390 = vmatpush.msra.mxu1 %v332_v21  ;;  %v319_v32 = vld [vmem:[#allocation5 + $0xe0] sm:$0xff]  ;;  %v320_v33 = vld [vmem:[#allocation5 + $0xe8] sm:$0xff]  ;;  %v321_v34 = vld [vmem:[#allocation5 + $0xf0] sm:$0xff] }
  0x43   : > { %410 = vmatpush.msra.mxu2 %v333_v22  ;;  %430 = vmatpush.msra.mxu3 %v334_v23  ;;  %v322_v35 = vld [vmem:[#allocation5 + $0xf8] sm:$0xff]  ;;  %v315_v36 = vld [vmem:[#allocation5 + $0xc0] sm:$0xff]  ;;  %v316_v37 = vld [vmem:[#allocation5 + $0xc8] sm:$0xff] }
  0x44   : > { %371 = vmatpush.msra.mxu0 %v327_v24  ;;  %391 = vmatpush.msra.mxu1 %v328_v25  ;;  %v317_v38 = vld [vmem:[#allocation5 + $0xd0] sm:$0xff]  ;;  %v318_v39 = vld [vmem:[#allocation5 + $0xd8] sm:$0xff]  ;;  %v311_v40 = vld [vmem:[#allocation5 + $0xa0] sm:$0xff] }
  0x45   : > { %411 = vmatpush.msra.mxu2 %v329_v26  ;;  %431 = vmatpush.msra.mxu3 %v330_v27  ;;  %v312_v41 = vld [vmem:[#allocation5 + $0xa8] sm:$0xff]  ;;  %v313_v42 = vld [vmem:[#allocation5 + $0xb0] sm:$0xff]  ;;  %v314_v43 = vld [vmem:[#allocation5 + $0xb8] sm:$0xff] }
  0x46   : > { %372 = vmatpush.msra.mxu0 %v323_v28  ;;  %392 = vmatpush.msra.mxu1 %v324_v29  ;;  %v307_v44 = vld [vmem:[#allocation5 + $0x80] sm:$0xff]  ;;  %v308_v45 = vld [vmem:[#allocation5 + $0x88] sm:$0xff]  ;;  %v309_v46 = vld [vmem:[#allocation5 + $0x90] sm:$0xff] }
  0x47   : > { %412 = vmatpush.msra.mxu2 %v325_v30  ;;  %432 = vmatpush.msra.mxu3 %v326_v31  ;;  %v310_v47 = vld [vmem:[#allocation5 + $0x98] sm:$0xff]  ;;  %v303_v48 = vld [vmem:[#allocation5 + $0x60] sm:$0xff]  ;;  %v304_v49 = vld [vmem:[#allocation5 + $0x68] sm:$0xff] }
  0x48   : > { %373 = vmatpush.msra.mxu0 %v319_v32  ;;  %393 = vmatpush.msra.mxu1 %v320_v33  ;;  %v305_v50 = vld [vmem:[#allocation5 + $0x70] sm:$0xff]  ;;  %v306_v51 = vld [vmem:[#allocation5 + $0x78] sm:$0xff]  ;;  %v299_v52 = vld [vmem:[#allocation5 + $0x40] sm:$0xff] }
  0x49   : > { %413 = vmatpush.msra.mxu2 %v321_v34  ;;  %433 = vmatpush.msra.mxu3 %v322_v35  ;;  %v300_v53 = vld [vmem:[#allocation5 + $0x48] sm:$0xff]  ;;  %v301_v54 = vld [vmem:[#allocation5 + $0x50] sm:$0xff]  ;;  %v302_v55 = vld [vmem:[#allocation5 + $0x58] sm:$0xff] }
  0x4a   : > { %374 = vmatpush.msra.mxu0 %v315_v36  ;;  %394 = vmatpush.msra.mxu1 %v316_v37  ;;  %v295_v56 = vld [vmem:[#allocation5 + $0x20] sm:$0xff]  ;;  %v296_v57 = vld [vmem:[#allocation5 + $0x28] sm:$0xff]  ;;  %v297_v58 = vld [vmem:[#allocation5 + $0x30] sm:$0xff] }
  0x4b   : > { %414 = vmatpush.msra.mxu2 %v317_v38  ;;  %434 = vmatpush.msra.mxu3 %v318_v39  ;;  %v298_v59 = vld [vmem:[#allocation5 + $0x38] sm:$0xff]  ;;  %v291_v60 = vld [vmem:[#allocation5] sm:$0xff]  ;;  %v292_v61 = vld [vmem:[#allocation5 + $0x8] sm:$0xff] }
  0x4c   : > { %375 = vmatpush.msra.mxu0 %v311_v40  ;;  %395 = vmatpush.msra.mxu1 %v312_v41  ;;  %v293_v62 = vld [vmem:[#allocation5 + $0x10] sm:$0xff]  ;;  %v294_v63 = vld [vmem:[#allocation5 + $0x18] sm:$0xff]  ;;  %v355_v1 = vld [vmem:[#allocation7] sm:$0xf] }
  0x4d   : > { %415 = vmatpush.msra.mxu2 %v313_v42  ;;  %435 = vmatpush.msra.mxu3 %v314_v43  ;;  %v290_v0 = vld [vmem:[%s1343_s23] sm:$0xff]  ;;  %v357_v2 = vperm.slane %v355_v1, 0  ;;  %v358_v3 = vperm.slane %v355_v1, 1  ;;  %v359_v10 = vperm.slane %v355_v1, 2  ;;  %v360_v11 = vperm.slane %v355_v1, 3  ;;  %v633_v37 = vld [vmem:[#allocation8 + $0x60] sm:$0xff] }
  0x4e   : > { %376 = vmatpush.msra.mxu0 %v307_v44  ;;  %396 = vmatpush.msra.mxu1 %v308_v45  ;;  %v636_v12 = vld [vmem:[#allocation8 + $0x78] sm:$0xff]  ;;  %v635_v16 = vld [vmem:[#allocation8 + $0x70] sm:$0xff]  ;;  %v634_v22 = vld [vmem:[#allocation8 + $0x68] sm:$0xff]  ;;  %s1137_s23 = scalar_lea.hbm %s1530_s5, 16 }
  0x4f   : > { %416 = vmatpush.msra.mxu2 %v309_v46  ;;  %436 = vmatpush.msra.mxu3 %v310_v47  ;;  %v652_v13 = vld [vmem:[#allocation8 + $0xf8] sm:$0xff]  ;;  %v651_v17 = vld [vmem:[#allocation8 + $0xf0] sm:$0xff]  ;;  %v650_v23 = vld [vmem:[#allocation8 + $0xe8] sm:$0xff]  ;;  %p1139_p8 = scmp.lt.s32.totalorder %s1137_s23, %s1133_s11 }
  0x50   : > { %377 = vmatpush.msra.mxu0 %v303_v48  ;;  %397 = vmatpush.msra.mxu1 %v304_v49  ;;  %v649_v38 = vld [vmem:[#allocation8 + $0xe0] sm:$0xff]  ;;  %v668_v42 = vld [vmem:[#allocation8 + $0x178] sm:$0xff]  ;;  %v667_v49 = vld [vmem:[#allocation8 + $0x170] sm:$0xff] }
  0x51   : > { %417 = vmatpush.msra.mxu2 %v305_v50  ;;  %437 = vmatpush.msra.mxu3 %v306_v51  ;;  %v684_v43 = vld [vmem:[#allocation8 + $0x1f8] sm:$0xff]  ;;  %v683_v50 = vld [vmem:[#allocation8 + $0x1f0] sm:$0xff]  ;;  %p1140_p7 = por %p1139_p8, %p1138_p12 }
  0x52   : > { %378 = vmatpush.msra.mxu0 %v299_v52  ;;  %398 = vmatpush.msra.mxu1 %v300_v53  ;;  %v632_v44 = vld [vmem:[#allocation8 + $0x58] sm:$0xff] }
  0x53   : > { %418 = vmatpush.msra.mxu2 %v301_v54  ;;  %438 = vmatpush.msra.mxu3 %v302_v55  ;;  %v648_v48 = vld [vmem:[#allocation8 + $0xd8] sm:$0xff]  ;;  %p1141_p9 = pnand %p1140_p7, %p1136_p5 }
  0x54   : > { %379 = vmatpush.msra.mxu0 %v295_v56  ;;  %399 = vmatpush.msra.mxu1 %v296_v57 }
  0x55   : > { %419 = vmatpush.msra.mxu2 %v297_v58  ;;  %439 = vmatpush.msra.mxu3 %v298_v59 }
  0x56   : > { %380 = vmatpush.msra.mxu0 %v291_v60  ;;  %400 = vmatpush.msra.mxu1 %v292_v61  ;;  %v631_v61 = vld [vmem:[#allocation8 + $0x50] sm:$0xff] }
  0x57   : > { %420 = vmatpush.msra.mxu2 %v293_v62  ;;  %440 = vmatpush.msra.mxu3 %v294_v63  ;;  %v647_v62 = vld [vmem:[#allocation8 + $0xd0] sm:$0xff]  ;;  %v666_v63 = vld [vmem:[#allocation8 + $0x168] sm:$0xff] }
  0x58   : > { %381 = vmatmul.f32.vlgmr.msra.gmra.mxu0 %v290_v0  ;;  %401 = vmatmul.f32.vlgmr.msra.gmra.mxu1 %v290_v0 }
  0x59   : > { %421 = vmatmul.f32.vlgmr.msra.gmra.mxu2 %v290_v0  ;;  %441 = vmatmul.f32.vlgmr.msra.gmra.mxu3 %v290_v0 }
  0x5a   : > { %689 = vmatpush.msrb.mxu0 %v636_v12  ;;  %709 = vmatpush.msrb.mxu1 %v652_v13 }
  0x5b   : > { %729 = vmatpush.msrb.mxu2 %v668_v42  ;;  %749 = vmatpush.msrb.mxu3 %v684_v43  ;;  %v644_v43 = vld [vmem:[#allocation8 + $0xb8] sm:$0xff] }
  0x5c   : > { %690 = vmatpush.msrb.mxu0 %v635_v16  ;;  %710 = vmatpush.msrb.mxu1 %v651_v17  ;;  %v646_v16 = vld [vmem:[#allocation8 + $0xc8] sm:$0xff]  ;;  %v665_v17 = vld [vmem:[#allocation8 + $0x160] sm:$0xff] }
  0x5d   : > { %730 = vmatpush.msrb.mxu2 %v667_v49  ;;  %750 = vmatpush.msrb.mxu3 %v683_v50 }
  0x5e   : > { %691 = vmatpush.msrb.mxu0 %v634_v22  ;;  %711 = vmatpush.msrb.mxu1 %v650_v23  ;;  %v681_v22 = vld [vmem:[#allocation8 + $0x1e0] sm:$0xff] }
  0x5f   : > { %731 = vmatpush.msrb.mxu2 %v666_v63  ;;  %v629_v23 = vld [vmem:[#allocation8 + $0x40] sm:$0xff]  ;;  %v642_v63 = vld [vmem:[#allocation8 + $0xa8] sm:$0xff] }
  0x60   : > { %692 = vmatpush.msrb.mxu0 %v633_v37  ;;  %712 = vmatpush.msrb.mxu1 %v649_v38  ;;  %v664_v37 = vld [vmem:[#allocation8 + $0x158] sm:$0xff] }
  0x61   : > { %732 = vmatpush.msrb.mxu2 %v665_v17  ;;  %v680_v38 = vld [vmem:[#allocation8 + $0x1d8] sm:$0xff] }
  0x62   : > { %693 = vmatpush.msrb.mxu0 %v632_v44  ;;  %713 = vmatpush.msrb.mxu1 %v648_v48  ;;  %v663_v44 = vld [vmem:[#allocation8 + $0x150] sm:$0xff] }
  0x63   : > { %733 = vmatpush.msrb.mxu2 %v664_v37  ;;  %v638_v37 = vld [vmem:[#allocation8 + $0x88] sm:$0xff] }
  0x64   : > { %694 = vmatpush.msrb.mxu0 %v631_v61  ;;  %714 = vmatpush.msrb.mxu1 %v647_v62  ;;  %v626_v62 = vld [vmem:[#allocation8 + $0x28] sm:$0xff] }
  0x65   : > { %734 = vmatpush.msrb.mxu2 %v663_v44 }
  0x66   : > { %715 = vmatpush.msrb.mxu1 %v646_v16 }
  0xd5   : > { %v382_v4 = vpop.f32.mrf.mxu0  ;;  %v402_v5 = vpop.f32.mrf.mxu1 }
  0xd6   : > { %v1358_v6 = vadd.f32 %v382_v4, %v357_v2  ;;  %v1360_v7 = vadd.f32 %v402_v5, %v358_v3  ;;  %v682_v3 = vld [vmem:[#allocation8 + $0x1e8] sm:$0xff] }
  0xd7   : > { %v630_v4 = vld [vmem:[#allocation8 + $0x48] sm:$0xff]  ;;  %751 = vmatpush.msrb.mxu3 %v682_v3  ;;  %v625_v3 = vld [vmem:[#allocation8 + $0x20] sm:$0xff] }
  0xd8   : > { %v1363_v8 = vmul.f32 0.70710677, %v1358_v6  ;;  %v1366_v9 = vmul.f32 0.70710677, %v1360_v7  ;;  %695 = vmatpush.msrb.mxu0 %v630_v4  ;;  %v641_v4 = vld [vmem:[#allocation8 + $0xa0] sm:$0xff] }
  0xd9   : > { %752 = vmatpush.msrb.mxu3 %v681_v22  ;;  %v675_v22 = vld [vmem:[#allocation8 + $0x1b0] sm:$0xff] }
  0xda   : > { %v453_v14 = vmul.f32 %v1363_v8, %v1363_v8  ;;  %v493_v15 = vmul.f32 %v1366_v9, %v1366_v9  ;;  %696 = vmatpush.msrb.mxu0 %v629_v23 }
  0xdb   : > { %753 = vmatpush.msrb.mxu3 %v680_v38 }
  0xdc   : > { %v1372_v18 = vmin.f32 %v453_v14, 16.0  ;;  %v1374_v19 = vmin.f32 %v493_v15, 16.0  ;;  %v422_v20 = vpop.f32.mrf.mxu2  ;;  %v442_v21 = vpop.f32.mrf.mxu3 }
  0xdd   : > { %v1376_v24 = vadd.f32 %v422_v20, %v359_v10  ;;  %v1378_v25 = vadd.f32 %v442_v21, %v360_v11 }
  0xde   : > { %v455_v26 = vmul.f32 2.1237322e-06, %v1372_v18  ;;  %v466_v27 = vmul.f32 3.8918573e-05, %v1372_v18  ;;  %v495_v28 = vmul.f32 2.1237322e-06, %v1374_v19 }
  0xdf   : > { %v506_v29 = vmul.f32 3.8918573e-05, %v1374_v19  ;;  %v1385_v30 = vmul.f32 0.70710677, %v1376_v24  ;;  %v1390_v36 = vmul.f32 0.70710677, %v1378_v25 }
  0xe0   : > { %v456_v31 = vadd.f32 0.00028619796, %v455_v26  ;;  %v467_v32 = vadd.f32 0.001143296, %v466_v27  ;;  %v496_v33 = vadd.f32 0.00028619796, %v495_v28 }
  0xe1   : > { %v507_v34 = vadd.f32 0.001143296, %v506_v29  ;;  %v533_v35 = vmul.f32 %v1385_v30, %v1385_v30  ;;  %v573_v47 = vmul.f32 %v1390_v36, %v1390_v36  ;;  %v645_v26 = vld [vmem:[#allocation8 + $0xc0] sm:$0xff] }
  0xe2   : > { %v457_v39 = vmul.f32 %v456_v31, %v1372_v18  ;;  %v468_v40 = vmul.f32 %v467_v32, %v1372_v18  ;;  %v497_v41 = vmul.f32 %v496_v33, %v1374_v19  ;;  %716 = vmatpush.msrb.mxu1 %v645_v26 }
  0xe3   : > { %v508_v45 = vmul.f32 %v507_v34, %v1374_v19  ;;  %v1396_v46 = vmin.f32 %v533_v35, 16.0  ;;  %v1405_v60 = vmin.f32 %v573_v47, 16.0 }
  0xe4   : > { %v458_v51 = vadd.f32 0.0036580483, %v457_v39  ;;  %v469_v52 = vadd.f32 0.014752088, %v468_v40  ;;  %v498_v53 = vadd.f32 0.0036580483, %v497_v41  ;;  %717 = vmatpush.msrb.mxu1 %v644_v43 }
  0xe5   : > { %v509_v54 = vadd.f32 0.014752088, %v508_v45  ;;  %v535_v55 = vmul.f32 2.1237322e-06, %v1396_v46  ;;  %v546_v56 = vmul.f32 3.8918573e-05, %v1396_v46 }
  0xe6   : > { %v459_v57 = vmul.f32 %v458_v51, %v1372_v18  ;;  %v470_v58 = vmul.f32 %v469_v52, %v1372_v18  ;;  %v499_v59 = vmul.f32 %v498_v53, %v1374_v19  ;;  %v575_v15 = vmul.f32 2.1237322e-06, %v1405_v60  ;;  %v628_v39 = vld [vmem:[#allocation8 + $0x38] sm:$0xff]  ;;  %v679_v45 = vld [vmem:[#allocation8 + $0x1d0] sm:$0xff] }
  0xe7   : > { %v510_v0 = vmul.f32 %v509_v54, %v1374_v19  ;;  %v536_v1 = vadd.f32 0.00028619796, %v535_v55  ;;  %v547_v2 = vadd.f32 0.001143296, %v546_v56  ;;  %v586_v21 = vmul.f32 3.8918573e-05, %v1405_v60  ;;  %697 = vmatpush.msrb.mxu0 %v628_v39  ;;  %754 = vmatpush.msrb.mxu3 %v679_v45 }
  0xe8   : > { %v460_v5 = vadd.f32 0.05243302, %v459_v57  ;;  %v471_v10 = vadd.f32 0.112945676, %v470_v58  ;;  %v500_v11 = vadd.f32 0.05243302, %v499_v59 }
  0xe9   : > { %v511_v12 = vadd.f32 0.112945676, %v510_v0  ;;  %v537_v13 = vmul.f32 %v536_v1, %v1396_v46  ;;  %v548_v14 = vmul.f32 %v547_v2, %v1396_v46  ;;  %v576_v33 = vadd.f32 0.00028619796, %v575_v15  ;;  %v627_v51 = vld [vmem:[#allocation8 + $0x30] sm:$0xff]  ;;  %v662_v56 = vld [vmem:[#allocation8 + $0x148] sm:$0xff] }
  0xea   : > { %v472_v20 = vmul.f32 %v471_v10, %v1372_v18  ;;  %v461_v27 = vmul.f32 %v460_v5, %v1372_v18  ;;  %v501_v41 = vmul.f32 %v500_v11, %v1374_v19  ;;  %v587_v42 = vadd.f32 0.001143296, %v586_v21  ;;  %698 = vmatpush.msrb.mxu0 %v627_v51  ;;  %v643_v55 = vld [vmem:[#allocation8 + $0xb0] sm:$0xff]  ;;  %v678_v57 = vld [vmem:[#allocation8 + $0x1c8] sm:$0xff]  ;;  %735 = vmatpush.msrb.mxu2 %v662_v56  ;;  %v661_v0 = vld [vmem:[#allocation8 + $0x140] sm:$0xff] }
  0xeb   : > { %v512_v28 = vmul.f32 %v511_v12, %v1374_v19  ;;  %v549_v29 = vadd.f32 0.014752088, %v548_v14  ;;  %v538_v32 = vadd.f32 0.0036580483, %v537_v13  ;;  %v577_v59 = vmul.f32 %v576_v33, %v1405_v60  ;;  %718 = vmatpush.msrb.mxu1 %v643_v55  ;;  %755 = vmatpush.msrb.mxu3 %v678_v57  ;;  %v677_v2 = vld [vmem:[#allocation8 + $0x1c0] sm:$0xff]  ;;  %v660_v11 = vld [vmem:[#allocation8 + $0x138] sm:$0xff] }
  0xec   : > { %v473_v31 = vadd.f32 0.4994258, %v472_v20  ;;  %v462_v47 = vadd.f32 0.18741608, %v461_v27  ;;  %v502_v58 = vadd.f32 0.18741608, %v501_v41  ;;  %v588_v61 = vmul.f32 %v587_v42, %v1405_v60  ;;  %699 = vmatpush.msrb.mxu0 %v626_v62  ;;  %736 = vmatpush.msrb.mxu2 %v661_v0 }
  0xed   : > { %v513_v34 = vadd.f32 0.4994258, %v512_v28  ;;  %v550_v35 = vmul.f32 %v549_v29, %v1396_v46  ;;  %v539_v53 = vmul.f32 %v538_v32, %v1396_v46  ;;  %719 = vmatpush.msrb.mxu1 %v642_v63  ;;  %756 = vmatpush.msrb.mxu3 %v677_v2  ;;  %v578_v13 = vadd.f32 0.0036580483, %v577_v59  ;;  %v624_v15 = vld [vmem:[#allocation8 + $0x18] sm:$0xff]  ;;  %v659_v21 = vld [vmem:[#allocation8 + $0x130] sm:$0xff] }
  0xee   : > { %v474_v40 = vmul.f32 %v473_v31, %v1372_v18  ;;  %v463_v1 = vmul.f32 %v462_v47, %v1372_v18  ;;  %700 = vmatpush.msrb.mxu0 %v625_v3  ;;  %v503_v12 = vmul.f32 %v502_v58, %v1374_v19  ;;  %v589_v14 = vadd.f32 0.014752088, %v588_v61  ;;  %737 = vmatpush.msrb.mxu2 %v660_v11  ;;  %v676_v18 = vld [vmem:[#allocation8 + $0x1b8] sm:$0xff]  ;;  %v639_v27 = vld [vmem:[#allocation8 + $0x90] sm:$0xff]  ;;  %v658_v28 = vld [vmem:[#allocation8 + $0x128] sm:$0xff] }
  0xef   : > { %v514_v48 = vmul.f32 %v513_v34, %v1374_v19  ;;  %v551_v49 = vadd.f32 0.112945676, %v550_v35  ;;  %v540_v5 = vadd.f32 0.05243302, %v539_v53  ;;  %720 = vmatpush.msrb.mxu1 %v641_v4  ;;  %757 = vmatpush.msrb.mxu3 %v676_v18  ;;  %v640_v20 = vld [vmem:[#allocation8 + $0x98] sm:$0xff]  ;;  %v623_v19 = vld [vmem:[#allocation8 + $0x10] sm:$0xff]  ;;  %v579_v45 = vmul.f32 %v578_v13, %v1405_v60 }
  0xf0   : > { %v1419_v50 = vadd.f32 1.0, %v474_v40  ;;  %v464_v16 = vadd.f32 1.1283791, %v463_v1  ;;  %701 = vmatpush.msrb.mxu0 %v624_v15  ;;  %v590_v26 = vmul.f32 %v589_v14, %v1405_v60  ;;  %738 = vmatpush.msrb.mxu2 %v659_v21  ;;  %v674_v34 = vld [vmem:[#allocation8 + $0x1a8] sm:$0xff]  ;;  %v504_v38 = vadd.f32 1.1283791, %v503_v12 }
  0xf1   : > { %v1421_v52 = vadd.f32 1.0, %v514_v48  ;;  %v552_v54 = vmul.f32 %v551_v49, %v1396_v46  ;;  %721 = vmatpush.msrb.mxu1 %v640_v20  ;;  %v541_v32 = vmul.f32 %v540_v5, %v1396_v46  ;;  %758 = vmatpush.msrb.mxu3 %v675_v22  ;;  %v622_v35 = vld [vmem:[#allocation8 + $0x8] sm:$0xff]  ;;  %v657_v41 = vld [vmem:[#allocation8 + $0x120] sm:$0xff]  ;;  %v656_v55 = vld [vmem:[#allocation8 + $0x118] sm:$0xff]  ;;  %v580_v3 = vadd.f32 0.05243302, %v579_v45 }
  0xf2   : > { %989 = vrcp.f32 %v1419_v50  ;;  %702 = vmatpush.msrb.mxu0 %v623_v19  ;;  %v591_v40 = vadd.f32 0.112945676, %v590_v26  ;;  %739 = vmatpush.msrb.mxu2 %v658_v28  ;;  %v673_v42 = vld [vmem:[#allocation8 + $0x1a0] sm:$0xff]  ;;  %v465_v43 = vmul.f32 %v464_v16, %v1363_v8  ;;  %v485_v49 = vand.u32 2147483647, %v1419_v50  ;;  %v672_v8 = vld [vmem:[#allocation8 + $0x198] sm:$0xff] }
  0xf3   : > { %991 = vrcp.f32 %v1421_v52  ;;  %v553_v10 = vadd.f32 0.4994258, %v552_v54  ;;  %722 = vmatpush.msrb.mxu1 %v639_v27  ;;  %759 = vmatpush.msrb.mxu3 %v674_v34  ;;  %v621_v47 = vld [vmem:[#allocation8] sm:$0xff]  ;;  %v487_v51 = vand.u32 2147483648, %v1419_v50  ;;  %v527_v57 = vand.u32 2147483648, %v1421_v52  ;;  %v655_v59 = vld [vmem:[#allocation8 + $0x110] sm:$0xff] }
  0xf4   : > { %703 = vmatpush.msrb.mxu0 %v622_v35  ;;  %v637_v48 = vld [vmem:[#allocation8 + $0x80] sm:$0xff]  ;;  %v592_v54 = vmul.f32 %v591_v40, %v1405_v60  ;;  %740 = vmatpush.msrb.mxu2 %v657_v41  ;;  %v542_v58 = vadd.f32 0.18741608, %v541_v32  ;;  %v525_v62 = vand.u32 2147483647, %v1421_v52  ;;  %v671_v0 = vld [vmem:[#allocation8 + $0x190] sm:$0xff]  ;;  %vm481_vm2 = vweird.f32 %v1419_v50 }
  0xf5   : > { %v554_v17 = vmul.f32 %v553_v10, %v1396_v46  ;;  %723 = vmatpush.msrb.mxu1 %v638_v37  ;;  %760 = vmatpush.msrb.mxu3 %v673_v42  ;;  %v505_v2 = vmul.f32 %v504_v38, %v1366_v9  ;;  %v654_v4 = vld [vmem:[#allocation8 + $0x108] sm:$0xff]  ;;  %v488_v10 = vor.u32 1.1754944e-38, %v487_v51  ;;  %vm521_vm4 = vweird.f32 %v1421_v52  ;;  %v653_v15 = vld [vmem:[#allocation8 + $0x100] sm:$0xff] }
  0xf6   : > { %704 = vmatpush.msrb.mxu0 %v621_v47  ;;  %v593_v63 = vadd.f32 0.4994258, %v592_v54  ;;  %741 = vmatpush.msrb.mxu2 %v656_v55  ;;  %vm486_vm5 = vcmp.eq.f32.partialorder %v485_v49, 8.507059e+37  ;;  %v528_v14 = vor.u32 1.1754944e-38, %v527_v57  ;;  %v543_v18 = vmul.f32 %v542_v58, %v1396_v46  ;;  %v669_v20 = vld [vmem:[#allocation8 + $0x180] sm:$0xff] }
  0xf7   : > { %v1440_v33 = vadd.f32 1.0, %v554_v17  ;;  %724 = vmatpush.msrb.mxu1 %v637_v48  ;;  %761 = vmatpush.msrb.mxu3 %v672_v8  ;;  %vm526_vm7 = vcmp.eq.f32.partialorder %v525_v62, 8.507059e+37  ;;  %v445_v35 = vmul.f32 0.5, %v1358_v6  ;;  %v446_v37 = vmul.f32 0.5, %v1360_v7 }
  0xf8   : > { %v1432_v23 = vpop.eup %989  ;;  %v594_v12 = vmul.f32 %v593_v63, %v1405_v60  ;;  %742 = vmatpush.msrb.mxu2 %v655_v59  ;;  %v544_v46 = vadd.f32 1.1283791, %v543_v18  ;;  %v447_v54 = vmul.f32 0.5, %v1376_v24 }
  0xf9   : > { %v1435_v29 = vpop.eup %991  ;;  %v477_v31 = vmul.f32 %v1432_v23, %v1419_v50  ;;  %993 = vrcp.f32 %v1440_v33  ;;  %vm482_vm0 = vweird.f32 %v1432_v23  ;;  %v670_v50 = vld [vmem:[#allocation8 + $0x188] sm:$0xff]  ;;  %762 = vmatpush.msrb.mxu3 %v671_v0  ;;  %v565_v28 = vand.u32 2147483647, %v1440_v33 }
  0xfa   : > { %v517_v39 = vmul.f32 %v1435_v29, %v1421_v52  ;;  %vm522_vm1 = vweird.f32 %v1435_v29  ;;  %vm1461_vm3 = vmor %vm481_vm2, %vm482_vm0  ;;  %743 = vmatpush.msrb.mxu2 %v654_v4  ;;  %v595_v26 = vadd.f32 1.0, %v594_v12  ;;  %vm561_vm9 = vweird.f32 %v1440_v33  ;;  %v988_v4 = vld [vmem:[%s1529_s4] ss:$0 sm:$0xff] }
  0xfb   : > { %v478_v44 = vsub.f32 1.0, %v477_v31  ;;  %vm523_vm6 = vmor %vm521_vm4, %vm522_vm1  ;;  %763 = vmatpush.msrb.mxu3 %v670_v50  ;;  %v567_v31 = vand.u32 2147483648, %v1440_v33  ;;  %v545_v42 = vmul.f32 %v544_v46, %v1385_v30  ;;  %vm566_vm11 = vcmp.eq.f32.partialorder %v565_v28, 8.507059e+37 }
  0xfc   : > { %v518_v53 = vsub.f32 1.0, %v517_v39  ;;  %744 = vmatpush.msrb.mxu2 %v653_v15  ;;  %995 = vrcp.f32 %v595_v26  ;;  %v607_v30 = vand.u32 2147483648, %v595_v26  ;;  %vm601_vm13 = vweird.f32 %v595_v26 }
  0xfd   : > { %v479_v56 = vmul.f32 %v1432_v23, %v478_v44  ;;  %764 = vmatpush.msrb.mxu3 %v669_v20 }
  0xfe   : > { %v519_v61 = vmul.f32 %v1435_v29, %v518_v53 }
  0xff   : > { %v480_v1 = vadd.f32 %v1432_v23, %v479_v56  ;;  %v994_v13 = vpop.eup %993  ;;  %v605_v56 = vand.u32 2147483647, %v595_v26 }
 0x100   : > { %v520_v11 = vadd.f32 %v1435_v29, %v519_v61  ;;  %v557_v17 = vmul.f32 %v994_v13, %v1440_v33  ;;  %vm562_vm8 = vweird.f32 %v994_v13 }
 0x101   : > { %v484_v9 = vsel %vm1461_vm3, %v1432_v23, %v480_v1  ;;  %v581_v23 = vmul.f32 %v580_v3, %v1405_v60  ;;  %vm563_vm10 = vmor %vm561_vm9, %vm562_vm8  ;;  %vm606_vm15 = vcmp.eq.f32.partialorder %v605_v56, 8.507059e+37  ;;  %v448_v1 = vmul.f32 0.5, %v1378_v25 }
 0x102   : > { %v489_v16 = vsel %vm486_vm5, %v488_v10, %v484_v9  ;;  %v524_v52 = vsel %vm523_vm6, %v1435_v29, %v520_v11  ;;  %v558_v27 = vsub.f32 1.0, %v557_v17  ;;  %v996_v48 = vpop.eup %995 }
 0x103   : > { %v490_v21 = vmul.f32 %v489_v16, %v465_v43  ;;  %v529_v22 = vsel %vm526_vm7, %v528_v14, %v524_v52  ;;  %v582_v38 = vadd.f32 0.18741608, %v581_v23  ;;  %v568_v43 = vor.u32 1.1754944e-38, %v567_v31 }
 0x104   : > { %v530_v19 = vmul.f32 %v529_v22, %v505_v2  ;;  %v559_v29 = vmul.f32 %v994_v13, %v558_v27  ;;  %v597_v7 = vmul.f32 %v996_v48, %v595_v26  ;;  %vm602_vm12 = vweird.f32 %v996_v48 }
 0x105   : > { %v899_v32 = vclamps-f32 %v490_v21, 1.0  ;;  %v583_v6 = vmul.f32 %v582_v38, %v1405_v60  ;;  %vm603_vm14 = vmor %vm601_vm13, %vm602_vm12  ;;  %v608_v60 = vor.u32 1.1754944e-38, %v607_v30 }
 0x106   : > { %v900_v34 = vclamps-f32 %v530_v19, 1.0  ;;  %v560_v39 = vadd.f32 %v994_v13, %v559_v29  ;;  %v598_v53 = vsub.f32 1.0, %v597_v7 }
 0x107   : > { %v613_v40 = vadd.f32 1.0, %v899_v32  ;;  %v584_v55 = vadd.f32 1.1283791, %v583_v6 }
 0x108   : > { %v614_v41 = vadd.f32 1.0, %v900_v34  ;;  %v564_v44 = vsel %vm563_vm10, %v994_v13, %v560_v39  ;;  %v599_v8 = vmul.f32 %v996_v48, %v598_v53 }
 0x109   : > { %v617_v45 = vmul.f32 %v613_v40, %v445_v35  ;;  %v569_v49 = vsel %vm566_vm11, %v568_v43, %v564_v44  ;;  %v585_v61 = vmul.f32 %v584_v55, %v1390_v36 }
 0x10a   : > { %v618_v47 = vmul.f32 %v614_v41, %v446_v37  ;;  %v570_v51 = vmul.f32 %v569_v49, %v545_v42  ;;  %v600_v58 = vadd.f32 %v996_v48, %v599_v8 }
 0x10b   : > { %705 = vmatmul.f32.vlgmr.msrb.gmra.mxu0 %v617_v45 }
 0x10c   : > { %725 = vmatmul.f32.vlgmr.msrb.gmra.mxu1 %v618_v47  ;;  %v901_v33 = vclamps-f32 %v570_v51, 1.0  ;;  %v604_v62 = vsel %vm603_vm14, %v996_v48, %v600_v58 }
 0x10d   : > { %v609_v63 = vsel %vm606_vm15, %v608_v60, %v604_v62 }
 0x10e   : > { %v615_v57 = vadd.f32 1.0, %v901_v33  ;;  %v610_v24 = vmul.f32 %v609_v63, %v585_v61 }
 0x110   : > { %v619_v59 = vmul.f32 %v615_v57, %v447_v54  ;;  %v902_v0 = vclamps-f32 %v610_v24, 1.0 }
 0x112   : > { %745 = vmatmul.f32.vlgmr.msrb.gmra.mxu2 %v619_v59  ;;  %v616_v2 = vadd.f32 1.0, %v902_v0 }
 0x114   : > { %v620_v3 = vmul.f32 %v616_v2, %v448_v1 }
 0x116   : > { %765 = vmatmul.f32.vlgmr.msrb.gmra.mxu3 %v620_v3 }
 0x188   : > { %v706_v5 = vpop.f32.mrf.mxu0 }
 0x189   : > { %v707_v10 = vadd.f32 %v988_v4, %v706_v5  ;;  %v726_v36 = vpop.f32.mrf.mxu1 }
 0x18b   : > { %v727_v12 = vadd.f32 %v726_v36, %v707_v10 }
 0x195   : > { %v746_v11 = vpop.f32.mrf.mxu2 }
 0x196   : > { %v747_v25 = vadd.f32 %v746_v11, %v727_v12 }
 0x199   : > { %v766_v50 = vpop.f32.mrf.mxu3 }
 0x19a   : > { %v767_v13 = vadd.f32 %v766_v50, %v747_v25 }
 0x19c   : > { %769 = vst [vmem:[%s289_s27] sm:$0xff] %v767_v13 }
 0x19d   : > { %1144 = shalt.err (!%p1141_p9)
}
 0x19e   : > { %921 = dma.vmem_to_hbm [thread:$0]  (%p1306_p13), %s784_s28, 128, %s786_s10, %s771_s9  }
 0x19f PF: > { %s797_s7 = sand.u32 1, %s1179_s18   ;;  %p1539_p10 = scmp.ge.s32.totalorder %s1191_s21, 2 }
 0x1a0   : > { %s798_s30 = scalar_lea.sflag [#allocation4], %s797_s7 }
 0x1a1   : > { %p938_p11 = pnand %p1539_p10, %p1311_p4 }
 0x1a3   : > { %p939_p0 = pneg %p938_p11 }
 0x1a5   : > { %1174 = dma.done.wait (%p939_p0), %s798_s30, 128  }
 0x1a6   : > { %1176 = vsyncadd (%p939_p0), %s798_s30, 4294967168  ;;  %p20_p2 = scmp.ge.s32.totalorder %s1286_s24, 4   ;;  %s1540_s18 = smov %s1183_s19 }
 0x1a7   : > { %s1541_s19 = smov %s1187_s20  ;;  %s1542_s20 = smov %s1298_s29 }
 0x1a8   : > { %s1543_s21 = smov %s1286_s24  ;;  %22 = sbr.rel (!%p20_p2) target bundleno = 7 (0x7), region = 97 }
 0x1ad   :  { %804 = vsyncpa [#allocation3], 1 }
 0x1ae   :  { %806 = vsyncpa [#allocation3 + $0x1], 1 }
 0x1af   :  { %807 = vsyncpa [#allocation6], 1 }
 0x1b0   :  { %808 = vsyncpa [#allocation9], 1 }
 0x1b1   :  { %809 = vsyncpa [#allocation4], 1 }
 0x1b2   :  { %811 = vsyncpa [#allocation4 + $0x1], 1 }

</bundles_post_ra>
